<compile_context>
chip_gen: v7x
topology: tpu7x:2x2x1
jax: 0.10.0
libtpu: 0.0.40
codegen_flags: <defaults>
</compile_context>

<pallas_src>
import jax
import jax.numpy as jnp
from jax.experimental import pallas as pl
from jax.experimental.pallas import tpu as pltpu


def _round_up(x, m):
    return (x + m - 1) // m * m


def highway_kernel(x_ref, w_ref, b_ref, o_ref):
    """x_ref: (TB, E); w_ref: (E, Ep) bf16 resident; b_ref: (1, Ep) f32; o_ref: (TB, Ep)."""
    x = x_ref[...].astype(jnp.bfloat16)          # VPU cast -> bf16-native MXU matmul
    y = jnp.dot(x, w_ref[...], preferred_element_type=jnp.float32) + b_ref[...]
    # relu(proj).  The source module's gate combine g*p + (1-g)*p == p, so it is
    # skipped (dead-gate elimination); eval-mode dropout is the identity.
    o_ref[...] = jnp.maximum(y, 0.0).astype(o_ref.dtype)


def pack_highway_params(wp, bp, wg=None, bg=None, *, weight_dtype=jnp.bfloat16):
    """Pack the torch-Linear proj params ONCE into a lane-dense bf16 weight.

    wp: (E, E) torch (out, in) layout; bp: (E,).
    wg/bg are accepted for interface parity with the PyTorch module but unused:
    the gate branch is algebraically the identity on the module's output.
    Returns w_packed (E, Ep) = wp^T zero-padded on the output axis to a multiple
    of 128, and b_packed (1, Ep) kept in f32 (bias is added post-accumulation).
    """
    del wg, bg
    e = wp.shape[0]
    ep = _round_up(e, 128)
    w = jnp.zeros((e, ep), weight_dtype).at[:, :e].set(wp.T.astype(weight_dtype))
    b = jnp.zeros((1, ep), jnp.float32).at[0, :e].set(bp.astype(jnp.float32))
    return w, b


def _choose_tb(bp_rows, e, ep, x_dsize, w_dsize, max_tb, vmem_budget):
    """Pick a batch-tile size (multiple of 8) and the padded row count."""
    resident = e * ep * w_dsize + ep * 4              # weight (1x, single-buffered) + bias

    def footprint(tb):
        return (resident
                + 2 * tb * e * x_dsize                # x tile, double-buffered
                + 2 * tb * ep * x_dsize               # out tile, double-buffered
                + 2 * tb * ep * 4)                    # f32 matmul result + elementwise temps

    cap = max(8, (max_tb // 8) * 8)
    while cap > 8 and footprint(cap) > vmem_budget:   # keep working set v7x-safe
        cap -= 8
    cap = min(cap, bp_rows)
    if bp_rows >= 16:                                 # >= 2 grid steps so ("parallel",)
        cap = min(cap, max(8, (bp_rows // 2) // 8 * 8))   # can shard across 2 TCs (v7x)
    # Prefer a tile that divides the batch exactly: no jnp.pad, no wasted rows.
    for tb in range(cap, 7, -8):
        if bp_rows % tb == 0 and (tb >= min(cap, 128) or bp_rows // tb <= 64):
            return tb, bp_rows
    # Awkward batch: pad up to a multiple of cap (bounded waste, few grid steps).
    return cap, _round_up(bp_rows, cap)


def highway_forward(x, w_packed, b_packed, *, max_tb=512, vmem_budget=32 << 20):
    """x: (B, E) activations; w_packed/b_packed from pack_highway_params."""
    b_rows, e = x.shape
    e_w, ep = w_packed.shape
    assert e_w == e and ep % 128 == 0 and b_packed.shape == (1, ep)
    # TODO(synk): for very large E (packed weight alone > ~32 MiB, e.g. E >= 4096
    # bf16) add an output-column grid axis (weight BlockSpec (E, TN), index_map
    # (0, j), marked "parallel") instead of keeping the whole weight resident.

    bp_rows = _round_up(b_rows, 8)
    x_dsize = x.dtype.itemsize
    tb, padded_rows = _choose_tb(bp_rows, e, ep, x_dsize,
                                 w_packed.dtype.itemsize, max_tb, vmem_budget)
    if padded_rows != b_rows:
        x = jnp.pad(x, ((0, padded_rows - b_rows), (0, 0)))

    # Scoped-VMEM limit from the actual footprint (+50% slack), clamped to be
    # valid on every generation (v5e 16 MiB default .. v7x 64 MiB physical).
    footprint = (e * ep * w_packed.dtype.itemsize + ep * 4
                 + 2 * tb * e * x_dsize
                 + 2 * tb * ep * x_dsize
                 + 2 * tb * ep * 4)
    vmem_limit = max(16 << 20, min(int(1.5 * footprint) + (2 << 20), 56 << 20))

    grid = (padded_rows // tb,)
    out = pl.pallas_call(
        highway_kernel,
        out_shape=jax.ShapeDtypeStruct((padded_rows, ep), x.dtype),
        grid_spec=pltpu.PrefetchScalarGridSpec(
            num_scalar_prefetch=0,
            grid=grid,
            in_specs=[
                # Activations: pipelined / double-buffered over the batch grid.
                pl.BlockSpec((tb, e), lambda i: (i, 0)),
                # Weight & bias: constant index_map -> resident, single-buffered.
                pl.BlockSpec((e, ep), lambda i: (0, 0),
                             pipeline_mode=pl.Buffered(1)),
                pl.BlockSpec((1, ep), lambda i: (0, 0),
                             pipeline_mode=pl.Buffered(1)),
            ],
            out_specs=pl.BlockSpec((tb, ep), lambda i: (i, 0)),
        ),
        compiler_params=pltpu.CompilerParams(
            dimension_semantics=("parallel",),
            vmem_limit_bytes=vmem_limit,
        ),
    )(x, w_packed, b_packed)

    if (padded_rows, ep) != (b_rows, e):
        out = out[:b_rows, :e]
    return out


def highway_reference(x, wp, bp, wg, bg):
    """Faithful f32 replica of the PyTorch forward (gate kept, dropout in eval)."""
    x_proj = jax.nn.relu(x @ wp.T + bp)
    x_gate = jax.nn.sigmoid(x @ wg.T + bg)
    return x_gate * x_proj + (1.0 - x_gate) * x_proj


if __name__ == "__main__":
    e_word = 32
    batch = 8

    key = jax.random.PRNGKey(0)
    kx, kwp, kbp, kwg, kbg = jax.random.split(key, 5)

    # Deterministic parameter init matching nn.Linear default:
    # uniform(-1/sqrt(fan_in), 1/sqrt(fan_in)) for both weight and bias.
    bound = 1.0 / jnp.sqrt(jnp.float32(e_word))
    wp = jax.random.uniform(kwp, (e_word, e_word), jnp.float32, -bound, bound)
    bp = jax.random.uniform(kbp, (e_word,), jnp.float32, -bound, bound)
    wg = jax.random.uniform(kwg, (e_word, e_word), jnp.float32, -bound, bound)
    bg = jax.random.uniform(kbg, (e_word,), jnp.float32, -bound, bound)

    x = jax.random.normal(kx, (batch, e_word), jnp.float32)

    # Parameters are packed ONCE, outside the forward path (bf16, no per-call .T).
    w_packed, b_packed = pack_highway_params(wp, bp, wg, bg)

    out = highway_forward(x, w_packed, b_packed)
    out = jax.block_until_ready(out)

    ref = highway_reference(x, wp, bp, wg, bg)
    assert out.shape == (batch, e_word)
    # Tolerance sized for the bf16 MXU matmul vs the f32 reference (E=32).
    assert jnp.allclose(out, ref, atol=3e-2, rtol=3e-2)

    print("KERNEL_OK")
</pallas_src>

<mosaic_0001>
module attributes {stable_mosaic.version = 11 : i64} {
  func.func @highway_kernel(%arg0: i32, %arg1: memref<8x32xf32, #tpu.memory_space<vmem>>, %arg2: memref<32x128xbf16, #tpu.memory_space<vmem>>, %arg3: memref<1x128xf32, #tpu.memory_space<vmem>>, %arg4: memref<8x128xf32, #tpu.memory_space<vmem>>) attributes {dimension_semantics = [#tpu.dimension_semantics<parallel>], iteration_bounds = array<i64: 1>, scalar_prefetch = 0 : i64, scratch_operands = 0 : i64, tpu.core_type = #tpu.core_type<tc>, window_params = [{transform_indices = @transform_0, window_bounds = array<i64: 8, 32>}, {pipeline_mode = #tpu.pipeline_mode<synchronous>, transform_indices = @transform_1, window_bounds = array<i64: 32, 128>}, {pipeline_mode = #tpu.pipeline_mode<synchronous>, transform_indices = @transform_2, window_bounds = array<i64: 1, 128>}, {transform_indices = @transform_3, window_bounds = array<i64: 8, 128>}]} {
    %c0 = arith.constant 0 : index
    %c0_0 = arith.constant 0 : index
    %0 = vector.load %arg1[%c0, %c0_0] : memref<8x32xf32, #tpu.memory_space<vmem>>, vector<8x32xf32>
    %1 = arith.truncf %0 : vector<8x32xf32> to vector<8x32xbf16>
    %c0_1 = arith.constant 0 : index
    %c0_2 = arith.constant 0 : index
    %2 = vector.load %arg2[%c0_1, %c0_2] : memref<32x128xbf16, #tpu.memory_space<vmem>>, vector<32x128xbf16>
    %cst = arith.constant dense<0.000000e+00> : vector<8x128xf32>
    %3 = tpu.matmul %1, %2, %cst {dimension_numbers = #tpu.dot_dimension_numbers<[1], [0], [0], [1], [0, 0, 1, 1], [], []>} : vector<8x32xbf16>, vector<32x128xbf16>, vector<8x128xf32> -> vector<8x128xf32>
    %c0_3 = arith.constant 0 : index
    %c0_4 = arith.constant 0 : index
    %4 = vector.load %arg3[%c0_3, %c0_4] : memref<1x128xf32, #tpu.memory_space<vmem>>, vector<1x128xf32>
    %5 = vector.broadcast %4 : vector<1x128xf32> to vector<8x128xf32>
    %6 = arith.addf %3, %5 : vector<8x128xf32>
    %cst_5 = arith.constant 0.000000e+00 : f32
    %7 = vector.broadcast %cst_5 : f32 to vector<8x128xf32>
    %8 = arith.maximumf %6, %7 : vector<8x128xf32>
    %c0_6 = arith.constant 0 : index
    %c0_7 = arith.constant 0 : index
    %9 = vector.load %arg4[%c0_6, %c0_7] : memref<8x128xf32, #tpu.memory_space<vmem>>, vector<8x128xf32>
    tpu.vector_store %arg4[%c0_6, %c0_7], %8 {strides = array<i32>} : memref<8x128xf32, #tpu.memory_space<vmem>>, vector<8x128xf32>,
    return
  }
  func.func @transform_0(%arg0: i32) -> (i32, i32) {
    %c0_i32 = arith.constant 0 : i32
    %c0_i32_0 = arith.constant 0 : i32
    return %arg0, %c0_i32 : i32, i32
  }
  func.func @transform_1(%arg0: i32) -> (i32, i32) {
    %c0_i32 = arith.constant 0 : i32
    %c0_i32_0 = arith.constant 0 : i32
    %c0_i32_1 = arith.constant 0 : i32
    return %c0_i32, %c0_i32_0 : i32, i32
  }
  func.func @transform_2(%arg0: i32) -> (i32, i32) {
    %c0_i32 = arith.constant 0 : i32
    %c0_i32_0 = arith.constant 0 : i32
    %c0_i32_1 = arith.constant 0 : i32
    return %c0_i32, %c0_i32_0 : i32, i32
  }
  func.func @transform_3(%arg0: i32) -> (i32, i32) {
    %c0_i32 = arith.constant 0 : i32
    %c0_i32_0 = arith.constant 0 : i32
    return %arg0, %c0_i32 : i32, i32
  }
}

</mosaic_0001>

<bundles_post_ra>
// kernel: tpu_custom_call.1
= control target key start
LH: loop header
LB: loop body
LE: loop exit
PB: predicated region body
PF: predicated region fallthrough
CT: control target
= control target key end

     0   :  { %8 = vsyncpa [#allocation3], 0  ;;  %s298_s0 = inlined_call_operand.hbm [shape: f32[8,32], index: 0, kind: input, shape index: {}]   ;;  %s299_s1 = inlined_call_operand.hbm [shape: bf16[32,128], index: 1, kind: input, shape index: {}]   ;;  %s300_s2 = inlined_call_operand.vmem [shape: f32[1,128], index: 2, kind: input, shape index: {}]   ;;  %s301_s3 = inlined_call_operand.hbm [shape: f32[8,128], index: 3, kind: output, shape index: {}]  }
   0x1   :  { %9 = vsyncpa [#allocation6], 0 }
   0x2   :  { %10 = vsyncpa [#allocation4], 0  ;;  %s225_s12 = smov [#allocation2]   ;;  %s226_s14 = smov [#allocation5]  }
   0x3   :  { %s17_s13 = sshll.u32 %s225_s12, 4  ;;  %s26_s15 = sshll.u32 %s226_s14, 4  ;;  %s18_s13 = int_to_ptr.vmem [resolvable:$true] %s17_s13  ;;  %s252_s15 = int_to_ptr.vmem [resolvable:$true] %s26_s15 }
   0x4   :  { %s153_s18 = scalar_lea.hbm %s298_s0, 128 }
   0x5   :  { %p154_p0 = scmp.ne.s32.totalorder %s298_s0, %s153_s18  ;;  %p157_p1 = scmp.lt.u32.totalorder %s153_s18, %s298_s0 }
   0x7   :  { %p159_p2 = pnand %p157_p1, %p154_p0 }
   0x9   :  { %162 = shalt.err (!%p159_p2)
}
   0xa   :  { %s163_s23 = scalar_lea.vmem %s18_s13, 128  ;;  %p168_p4 = scmp.lt.s32.totalorder %s18_s13, %s18_s13 }
   0xb   :  { %p164_p3 = scmp.ne.s32.totalorder %s18_s13, %s163_s23  ;;  %p169_p5 = scmp.lt.s32.totalorder %s163_s23, %s163_s23 }
   0xd   :  { %p170_p6 = por %p169_p5, %p168_p4 }
   0xf   :  { %p171_p7 = pnand %p170_p6, %p164_p3 }
  0x11   :  { %174 = shalt.err (!%p171_p7)
}
  0x12   :  { %20 = dma.hbm_to_vmem [thread:$0]  %s298_s0, 128, %s18_s13, [#allocation3]  }
  0x13   :  { %s175_s28 = scalar_lea.hbm %s299_s1, 256 }
  0x14   :  { %p176_p8 = scmp.ne.s32.totalorder %s299_s1, %s175_s28  ;;  %p179_p9 = scmp.lt.u32.totalorder %s175_s28, %s299_s1 }
  0x16   :  { %p181_p10 = pnand %p179_p9, %p176_p8 }
  0x18   :  { %184 = shalt.err (!%p181_p10)
}
  0x19   :  { %s185_s6 = scalar_lea.vmem %s252_s15, 256  ;;  %p190_p12 = scmp.lt.s32.totalorder %s252_s15, %s252_s15 }
  0x1a   :  { %p186_p11 = scmp.ne.s32.totalorder %s252_s15, %s185_s6  ;;  %p191_p13 = scmp.lt.s32.totalorder %s185_s6, %s185_s6 }
  0x1c   :  { %p192_p0 = por %p191_p13, %p190_p12 }
  0x1e   :  { %p193_p1 = pnand %p192_p0, %p186_p11 }
  0x20   :  { %196 = shalt.err (!%p193_p1)
}
  0x21   :  { %s227_s0 = smov 64   ;;  %s228_s7 = smov 4  }
  0x22   :  { %32 = dma.hbm_to_vmem [thread:$0]  %s299_s1, 256, %s252_s15, [#allocation6], %s227_s0, %s227_s0, %s228_s7  }
  0x23   :  { %219 = dma.done.wait [#allocation3], 128  }
  0x24   :  { %220 = vsyncadd [#allocation3], 4294967168 }
  0x25   :  { %221 = dma.done.wait [#allocation6], 256  }
  0x26   :  { %222 = vsyncadd [#allocation6], 4294967040  ;;  %v229_v0 = vmov 0.0   ;;  %vm230_vm0 = vmmov 0   ;;  %v151_v1 = vld [vmem:[#allocation5] sm:$0xff]   ;;  %v152_v2 = vld [vmem:[#allocation5 + $0x8] sm:$0xff]  }
  0x27   :  { %136 = vmatprep.subr.bf16.mxu0 %v229_v0  ;;  %140 = vmatprep.mubr.msk.bf16.mxu0 %vm230_vm0, %v229_v0  ;;  %v42_v3 = vld [vmem:[#allocation2] sm:$0xff]  ;;  %vm67_vm1 = vcmask 261120   ;;  %s231_s1 = smov [#allocation7]  }
  0x28   :  { %137 = vmatpush3.bf16.msra.mxu0 %v151_v1  ;;  %v43_v4 = vpack.c.bf16 %v42_v3, %v42_v3  ;;  %v129_v5 = vld [vmem:[%s300_s2] ss:$0 sm:$0xff]  ;;  %s119_s12 = sshll.u32 %s231_s1, 4  ;;  %s120_s12 = int_to_ptr.vmem [resolvable:$true] %s119_s12 }
  0x29   :  { %138 = vmatprep.subr.bf16.mxu0 %v229_v0  ;;  %s197_s13 = scalar_lea.vmem %s120_s12, 128  ;;  %p202_p3 = scmp.lt.s32.totalorder %s120_s12, %s120_s12 }
  0x2a   :  { %p198_p2 = scmp.ne.s32.totalorder %s120_s12, %s197_s13  ;;  %p203_p4 = scmp.lt.s32.totalorder %s197_s13, %s197_s13 }
  0x2c   :  { %139 = vmatpush3.bf16.msra.mxu0 %v152_v2  ;;  %p204_p5 = por %p203_p4, %p202_p3 }
  0x2e   :  { %p205_p6 = pnand %p204_p5, %p198_p2 }
  0x2f   :  { %141 = vmatmul.mubr.msk.bf16.vlgmr.msra.gmra.mrb[0].mxu0 %vm67_vm1, %v43_v4 }
 0x102   :  { %v105_v6 = vpop.f32.mrb[0].mxu0 }
 0x103   :  { %v106_v7 = vadd.f32 %v129_v5, %v105_v6  ;;  %v142_v8 = vpop.f32.mrb[1].mxu0 }
 0x104   :  { %v108_v9 = vpop.f32.mrb[2].mxu0 }
 0x105   :  { %v111_v10 = vmax.f32 %v106_v7, 0.0  ;;  %v143_v11 = vpop.f32.mrb[3].mxu0 }
 0x107   :  { %112 = vst [vmem:[#allocation7] sm:$0xff] %v111_v10 }
 0x108   :  { %208 = shalt.err (!%p205_p6)
}
 0x109   :  { %s209_s2 = scalar_lea.hbm %s301_s3, 128 }
 0x10a   :  { %p210_p7 = scmp.ne.s32.totalorder %s301_s3, %s209_s2  ;;  %p213_p8 = scmp.lt.u32.totalorder %s209_s2, %s301_s3 }
 0x10c   :  { %p215_p9 = pnand %p213_p8, %p210_p7 }
 0x10e   :  { %218 = shalt.err (!%p215_p9)
}
 0x10f   :  { %122 = dma.vmem_to_hbm [thread:$0]  %s120_s12, 128, %s301_s3, [#allocation4]  }
 0x110   :  { %223 = dma.done.wait [#allocation4], 128  }
 0x111   :  { %224 = vsyncadd [#allocation4], 4294967168 }
 0x112   :  { %126 = vsyncpa [#allocation3], 1 }
 0x113   :  { %127 = vsyncpa [#allocation6], 1 }
 0x114   :  { %128 = vsyncpa [#allocation4], 1 }

</bundles_post_ra>
